<compile_context>
chip_gen: v6e
topology: v6e:2x2x1
jax: 0.10.0
libtpu: 0.0.40
codegen_flags: <defaults>
</compile_context>

<pallas_src>
import jax
import jax.numpy as jnp
from jax.experimental import pallas as pl
from jax.experimental.pallas import tpu as pltpu


def _fused_conv_pool_gemm_kernel(w_ref, b_ref, p_ref, o_ref):
    # w_ref: (Cout_p, F_p)  fused stride-2 conv weight (compute dtype)
    # b_ref: (Cout_p, 1)    bias, f32 (zero-padded rows)
    # p_ref: (F_p, bm)      im2col patch block, pooled output pixels on lanes
    # o_ref: (Cout_p, bm)   lane-dense output block
    acc = jnp.dot(w_ref[...], p_ref[...], preferred_element_type=jnp.float32)
    o_ref[...] = (acc + b_ref[...]).astype(o_ref.dtype)


def _round_up(x, m):
    return (x + m - 1) // m * m


def conv_mean_pool(x_nchw, w_oihw, b, kernel_size, *, block_m=512,
                   compute_dtype=jnp.bfloat16):
    """ConvMeanPool forward: 'same' conv2d (stride 1) + 2x2 mean pool."""
    N, Cin, H, W = x_nchw.shape
    Cout = w_oihw.shape[0]
    K = kernel_size
    assert K % 2 == 1, "only odd kernel sizes (same padding) supported"
    assert H % 2 == 0 and W % 2 == 0
    p = (K - 1) // 2
    Ho, Wo = H // 2, W // 2
    T = K + 1                       # effective (fused) kernel size, stride 2
    F = T * T * Cin                 # contraction length
    M = N * Ho * Wo                 # all pooled output pixels of the whole batch

    # ---- fused weight: conv(K, s=1) then 2x2 mean pool == conv(K+1, s=2) ----
    w_khwc = jnp.transpose(w_oihw, (2, 3, 1, 0)).astype(jnp.float32)  # (K,K,Cin,Cout)
    w_eff = jnp.zeros((T, T, Cin, Cout), jnp.float32)
    for dy in (0, 1):
        for dx in (0, 1):
            w_eff = w_eff.at[dy:dy + K, dx:dx + K].add(w_khwc)
    w_eff = 0.25 * w_eff
    w_mat = w_eff.reshape(F, Cout).T.astype(compute_dtype)            # (Cout, F)

    # ---- patch matrix (pure layout plumbing, no FLOPs) ----
    # rows  = (a, b, ci) taps of the fused kernel
    # cols  = (n, ho, wo) pooled output pixels -> lane-dense M on the last dim
    x_nhwc = jnp.transpose(x_nchw, (0, 2, 3, 1))                      # NCHW -> NHWC
    x_pad = jnp.pad(x_nhwc, ((0, 0), (p, p), (p, p), (0, 0)))         # (N,H+2p,W+2p,Cin)
    taps = []
    for a in range(T):
        for bb in range(T):
            taps.append(jax.lax.slice(
                x_pad,
                (0, a, bb, 0),
                (N, a + 2 * Ho - 1, bb + 2 * Wo - 1, Cin),
                (1, 2, 2, 1)))                                        # (N,Ho,Wo,Cin)
    patches = jnp.stack(taps, axis=0)                                 # (T*T,N,Ho,Wo,Cin)
    patches = jnp.transpose(patches, (0, 4, 1, 2, 3)).reshape(F, M)   # (F, M)
    patches = patches.astype(compute_dtype)

    bias = b.reshape(Cout, 1).astype(jnp.float32)

    # ---- zero-pad Cout / F so (sublane, lane) tiling is clean for any shape --
    Cout_p = _round_up(Cout, 8)
    F_p = _round_up(F, 32)          # multiple of 32 covers f32 / bf16 / int8 packing
    if Cout_p != Cout or F_p != F:
        w_mat = jnp.pad(w_mat, ((0, Cout_p - Cout), (0, F_p - F)))
        bias = jnp.pad(bias, ((0, Cout_p - Cout), (0, 0)))
        patches = jnp.pad(patches, ((0, F_p - F), (0, 0)))

    # ---- tile M (the lane dim); one grid step for small problems ----
    bm = min(_round_up(M, 128), _round_up(block_m, 128))
    Mp = _round_up(M, bm)
    if Mp != M:
        patches = jnp.pad(patches, ((0, 0), (0, Mp - M)))

    out_t = pl.pallas_call(
        _fused_conv_pool_gemm_kernel,
        out_shape=jax.ShapeDtypeStruct((Cout_p, Mp), x_nchw.dtype),
        grid=(Mp // bm,),
        in_specs=[
            pl.BlockSpec((Cout_p, F_p), lambda m: (0, 0)),    # fused weight
            pl.BlockSpec((Cout_p, 1), lambda m: (0, 0)),      # bias
            pl.BlockSpec((F_p, bm), lambda m: (0, m)),        # patch block
        ],
        out_specs=pl.BlockSpec((Cout_p, bm), lambda m: (0, m)),
        compiler_params=pltpu.CompilerParams(
            dimension_semantics=("parallel",)),
    )(w_mat, bias, patches)

    out = out_t[:Cout, :M].reshape(Cout, N, Ho, Wo)
    return jnp.transpose(out, (1, 0, 2, 3))                  # (N, Cout, H/2, W/2)


def conv_mean_pool_ref(x_nchw, w_oihw, b, kernel_size):
    """Pure-JAX reference mirroring the PyTorch module (full f32 precision)."""
    p = (kernel_size - 1) // 2
    y = jax.lax.conv_general_dilated(
        x_nchw, w_oihw, window_strides=(1, 1), padding=[(p, p), (p, p)],
        dimension_numbers=("NCHW", "OIHW", "NCHW"),
        precision=jax.lax.Precision.HIGHEST)
    y = y + b.reshape(1, -1, 1, 1)
    return (y[:, :, ::2, ::2] + y[:, :, 1::2, ::2]
            + y[:, :, ::2, 1::2] + y[:, :, 1::2, 1::2]) / 4.0


if __name__ == "__main__":
    key = jax.random.PRNGKey(0)
    kx, kw, kb = jax.random.split(key, 3)

    # ConvMeanPool(input_dim=4, output_dim=8, kernel_size=3) on x: (2, 4, 16, 16)
    N, Cin, Cout, H, W, K = 2, 4, 8, 16, 16, 3
    x = jax.random.normal(kx, (N, Cin, H, W), dtype=jnp.float32)

    # Deterministic synthetic parameters (Conv2d-style uniform fan-in bound).
    fan_in = Cin * K * K
    bound = 1.0 / (fan_in ** 0.5)
    w = jax.random.uniform(kw, (Cout, Cin, K, K), jnp.float32, -bound, bound)
    b = jax.random.uniform(kb, (Cout,), jnp.float32, -bound, bound)

    ref = conv_mean_pool_ref(x, w, b, K)

    # f32 compute path: tight tolerance (pure logic/layout check).
    out_f32 = jax.block_until_ready(
        conv_mean_pool(x, w, b, K, compute_dtype=jnp.float32))
    assert out_f32.shape == (N, Cout, H // 2, W // 2)
    if not jnp.allclose(out_f32, ref, rtol=1e-4, atol=1e-4):
        raise AssertionError("Pallas ConvMeanPool (f32) mismatch vs reference")

    # Default bf16-MXU path (f32 accumulation): tolerance sized for bf16
    # operand rounding (~2^-8 relative) over the F=64 contraction.
    out = jax.block_until_ready(conv_mean_pool(x, w, b, K))
    assert out.shape == (N, Cout, H // 2, W // 2)
    if not jnp.allclose(out, ref, rtol=2e-2, atol=2e-2):
        raise AssertionError("Pallas ConvMeanPool (bf16) mismatch vs reference")

    print("KERNEL_OK")
</pallas_src>

<mosaic_0001>
module attributes {stable_mosaic.version = 11 : i64} {
  func.func @_fused_conv_pool_gemm_kernel(%arg0: i32, %arg1: memref<8x64xf32, #tpu.memory_space<vmem>>, %arg2: memref<8x1xf32, #tpu.memory_space<vmem>>, %arg3: memref<64x128xf32, #tpu.memory_space<vmem>>, %arg4: memref<8x128xf32, #tpu.memory_space<vmem>>) attributes {dimension_semantics = [#tpu.dimension_semantics<parallel>], iteration_bounds = array<i64: 1>, scalar_prefetch = 0 : i64, scratch_operands = 0 : i64, tpu.core_type = #tpu.core_type<tc>, window_params = [{pipeline_mode = #tpu.pipeline_mode<synchronous>, transform_indices = @transform_0, window_bounds = array<i64: 8, 64>}, {pipeline_mode = #tpu.pipeline_mode<synchronous>, transform_indices = @transform_1, window_bounds = array<i64: 8, 1>}, {transform_indices = @transform_2, window_bounds = array<i64: 64, 128>}, {transform_indices = @transform_3, window_bounds = array<i64: 8, 128>}]} {
    %c0 = arith.constant 0 : index
    %c0_0 = arith.constant 0 : index
    %0 = vector.load %arg1[%c0, %c0_0] : memref<8x64xf32, #tpu.memory_space<vmem>>, vector<8x64xf32>
    %c0_1 = arith.constant 0 : index
    %c0_2 = arith.constant 0 : index
    %1 = vector.load %arg3[%c0_1, %c0_2] : memref<64x128xf32, #tpu.memory_space<vmem>>, vector<64x128xf32>
    %cst = arith.constant dense<0.000000e+00> : vector<8x128xf32>
    %2 = tpu.matmul %0, %1, %cst {dimension_numbers = #tpu.dot_dimension_numbers<[1], [0], [0], [1], [0, 0, 1, 1], [], []>} : vector<8x64xf32>, vector<64x128xf32>, vector<8x128xf32> -> vector<8x128xf32>
    %c0_3 = arith.constant 0 : index
    %c0_4 = arith.constant 0 : index
    %3 = vector.load %arg2[%c0_3, %c0_4] : memref<8x1xf32, #tpu.memory_space<vmem>>, vector<8x1xf32>
    %4 = vector.broadcast %3 : vector<8x1xf32> to vector<8x128xf32>
    %5 = arith.addf %2, %4 : vector<8x128xf32>
    %c0_5 = arith.constant 0 : index
    %c0_6 = arith.constant 0 : index
    %6 = vector.load %arg4[%c0_5, %c0_6] : memref<8x128xf32, #tpu.memory_space<vmem>>, vector<8x128xf32>
    tpu.vector_store %arg4[%c0_5, %c0_6], %5 {strides = array<i32>} : memref<8x128xf32, #tpu.memory_space<vmem>>, vector<8x128xf32>,
    return
  }
  func.func @transform_0(%arg0: i32) -> (i32, i32) {
    %c0_i32 = arith.constant 0 : i32
    %c0_i32_0 = arith.constant 0 : i32
    %c0_i32_1 = arith.constant 0 : i32
    return %c0_i32, %c0_i32_0 : i32, i32
  }
  func.func @transform_1(%arg0: i32) -> (i32, i32) {
    %c0_i32 = arith.constant 0 : i32
    %c0_i32_0 = arith.constant 0 : i32
    %c0_i32_1 = arith.constant 0 : i32
    return %c0_i32, %c0_i32_0 : i32, i32
  }
  func.func @transform_2(%arg0: i32) -> (i32, i32) {
    %c0_i32 = arith.constant 0 : i32
    %c0_i32_0 = arith.constant 0 : i32
    return %c0_i32, %arg0 : i32, i32
  }
  func.func @transform_3(%arg0: i32) -> (i32, i32) {
    %c0_i32 = arith.constant 0 : i32
    %c0_i32_0 = arith.constant 0 : i32
    return %c0_i32, %arg0 : i32, i32
  }
}

</mosaic_0001>

<bundles_post_ra>
// kernel: tpu_custom_call.1
= control target key start
LH: loop header
LB: loop body
LE: loop exit
PB: predicated region body
PF: predicated region fallthrough
CT: control target
= control target key end

     0   :  { %8 = vsyncpa [#allocation3], 0  ;;  %s254_s0 = inlined_call_operand.vmem [shape: f32[8,64], index: 0, kind: input, shape index: {}]   ;;  %s255_s1 = inlined_call_operand.vmem [shape: f32[8,1], index: 1, kind: input, shape index: {}]   ;;  %s256_s2 = inlined_call_operand.hbm [shape: f32[64,128], index: 2, kind: input, shape index: {}]   ;;  %s257_s3 = inlined_call_operand.hbm [shape: f32[8,128], index: 3, kind: output, shape index: {}]  }
   0x1   :  { %9 = vsyncpa [#allocation4], 0  ;;  %s215_s12 = smov [#allocation2]  }
   0x2   :  { %s19_s13 = sshll.u32 %s215_s12, 4  ;;  %s20_s13 = int_to_ptr.vmem [resolvable:$true] %s19_s13 }
   0x3   :  { %s179_s14 = scalar_lea.vmem %s20_s13, 1024  ;;  %p184_p1 = scmp.lt.s32.totalorder %s20_s13, %s20_s13 }
   0x4   :  { %p180_p0 = scmp.ne.s32.totalorder %s20_s13, %s179_s14  ;;  %p185_p2 = scmp.lt.s32.totalorder %s179_s14, %s179_s14 }
   0x6   :  { %p186_p3 = por %p185_p2, %p184_p1 }
   0x8   :  { %p187_p4 = pnand %p186_p3, %p180_p0 }
   0xa   :  { %190 = shalt.err (!%p187_p4)
}
   0xb   :  { %s216_s15 = smov 128   ;;  %s217_s16 = smov 8  }
   0xc   :  { %25 = dma.hbm_to_vmem [thread:$0]  %s256_s2, 1024, %s20_s13, [#allocation3], %s216_s15, %s216_s15, %s217_s16  }
   0xd   :  { %211 = dma.done.wait [#allocation3], 1024  }
   0xe   :  { %212 = vsyncadd [#allocation3], 4294966272  ;;  %v218_v0 = vmov 0.0   ;;  %vm219_vm0 = vmmov 0   ;;  %v220_v1 = vmov 0   ;;  %v37_v2 = vld [vmem:[#allocation2 + $0x38] sm:$0xff] }
   0xf   :  { %144 = vmatprep.subr.mxu0 %v218_v0  ;;  %160 = vmatprep.mubr.msk.f32.mxu0 %vm219_vm0, %v218_v0  ;;  %v36_v3 = vld [vmem:[#allocation2 + $0x30] sm:$0xff]  ;;  %v35_v4 = vld [vmem:[#allocation2 + $0x28] sm:$0xff]  ;;  %v38_v5 = vld [vmem:[%s255_s1] sm:$0xff]  ;;  %vm44_vm1 = vcmask 523264   ;;  %s221_s1 = smov [#allocation5]  }
  0x10   :  { %170 = vset.pattern.permute.xlu0 %v220_v1  ;;  %145 = vmatpush3.msra.mxu0 %v37_v2  ;;  %v34_v6 = vld [vmem:[#allocation2 + $0x20] sm:$0xff]  ;;  %v33_v7 = vld [vmem:[#allocation2 + $0x18] sm:$0xff]  ;;  %v32_v8 = vld [vmem:[#allocation2 + $0x10] sm:$0xff]  ;;  %s125_s22 = sshll.u32 %s221_s1, 4  ;;  %s126_s22 = int_to_ptr.vmem [resolvable:$true] %s125_s22 }
  0x11   :  { %146 = vmatprep.subr.mxu0 %v218_v0  ;;  %41 = vperm.xlu0 %170, %v38_v5   ;;  %v31_v9 = vld [vmem:[#allocation2 + $0x8] sm:$0xff]  ;;  %v30_v10 = vld [vmem:[#allocation2] sm:$0xff]  ;;  %s191_s23 = scalar_lea.vmem %s126_s22, 128  ;;  %p196_p6 = scmp.lt.s32.totalorder %s126_s22, %s126_s22 }
  0x12   :  { %147 = vmatpush3.msra.mxu0 %v36_v3  ;;  %v29_v11 = vld [vmem:[%s254_s0] sm:$0xff]  ;;  %p192_p5 = scmp.ne.s32.totalorder %s126_s22, %s191_s23  ;;  %p197_p7 = scmp.lt.s32.totalorder %s191_s23, %s191_s23 }
  0x13   :  { %148 = vmatprep.subr.mxu0 %v218_v0 }
  0x14   :  { %149 = vmatpush3.msra.mxu0 %v35_v4  ;;  %p198_p8 = por %p197_p7, %p196_p6 }
  0x15   :  { %150 = vmatprep.subr.mxu0 %v218_v0 }
  0x16   :  { %151 = vmatpush3.msra.mxu0 %v34_v6  ;;  %p199_p9 = pnand %p198_p8, %p192_p5 }
  0x17   :  { %152 = vmatprep.subr.mxu0 %v218_v0 }
  0x18   :  { %153 = vmatpush3.msra.mxu0 %v33_v7 }
  0x19   :  { %154 = vmatprep.subr.mxu0 %v218_v0 }
  0x1a   :  { %155 = vmatpush3.msra.mxu0 %v32_v8 }
  0x1b   :  { %156 = vmatprep.subr.mxu0 %v218_v0 }
  0x1c   :  { %157 = vmatpush3.msra.mxu0 %v31_v9 }
  0x1d   :  { %158 = vmatprep.subr.mxu0 %v218_v0 }
  0x1e   :  { %159 = vmatpush3.msra.mxu0 %v30_v10 }
  0x1f   :  { %161 = vmatmul.mubr.msk.f32.vlgmr.msra.gmra.mxu0 %vm44_vm1, %v29_v11 }
  0x8c   :  { %v42_v12 = vpop.permute.xlu0 %41 }
  0xdf   :  { %v114_v13 = vpop.f32.mrf.mxu0 }
  0xe0   :  { %v115_v14 = vadd.f32 %v114_v13, %v42_v12 }
  0xe1   :  { %v162_v15 = vpop.f32.mrf.mxu0 }
  0xe2   :  { %118 = vst [vmem:[#allocation5] sm:$0xff] %v115_v14 }
  0xe3   :  { %202 = shalt.err (!%p199_p9)
}
  0xe4   :  { %128 = dma.vmem_to_hbm [thread:$0]  %s126_s22, 128, %s257_s3, [#allocation4]  }
  0xe5   :  { %213 = dma.done.wait [#allocation4], 128  }
  0xe6   :  { %214 = vsyncadd [#allocation4], 4294967168 }
  0xe7   :  { %132 = vsyncpa [#allocation3], 1 }
  0xe8   :  { %133 = vsyncpa [#allocation4], 1 }

</bundles_post_ra>
